<compile_context>
chip_gen: v7x
topology: tpu7x:2x2x1
jax: 0.10.0
libtpu: 0.0.40
codegen_flags: <defaults>
</compile_context>

<pallas_src>
import functools

import jax
import jax.numpy as jnp
from jax import lax
from jax.experimental import pallas as pl
from jax.experimental.pallas import tpu as pltpu

_U32_MAX = (1 << 32) - 1


def _pick_tile(S, preferred=128):
    """Largest tile <= preferred that divides S and satisfies the (8,128) rule."""
    if S <= preferred:
        return S
    if S % preferred == 0:
        return preferred
    for t in range(preferred - 8, 7, -8):   # multiples of 8, descending
        if S % t == 0:
            return t
    return S                                # fall back: untiled along this axis


def _vmem_limit(est_bytes):
    """Raise scoped VMEM only when needed; cap at 64 MiB (v7x physical VMEM)."""
    default = 32 * 1024 * 1024
    if est_bytes <= default:
        return None
    return int(min(2 * est_bytes, 64 * 1024 * 1024))


def _accurate_reciprocal(x):
    """EUP approx reciprocal + 2 Newton steps on a tiny (rows, 1) tensor."""
    inv = pl.reciprocal(x, approx=True)
    inv = inv * (2.0 - x * inv)
    inv = inv * (2.0 - x * inv)
    return inv


def _softmax_rows(s):
    """Numerically-stable row softmax of an f32 (rows, cols) tile."""
    m = jnp.max(s, axis=-1, keepdims=True)
    e = jnp.exp(s - m)
    denom = jnp.sum(e, axis=-1, keepdims=True)
    return e * _accurate_reciprocal(denom)


def _fmix32(x):
    """murmur3 32-bit finalizer (good avalanche), pure VPU integer ops."""
    x = x ^ (x >> 16)
    x = x * jnp.uint32(0x7FEB352D)
    x = x ^ (x >> 15)
    x = x * jnp.uint32(0x846CA68B)
    x = x ^ (x >> 16)
    return x


def _apply_dropout(x, dropout_p, seed, plane, row0, col0):
    """Inverted dropout on an f32 tile (keep w.p. 1-p, rescale by 1/(1-p)).

    Mask is a stateless hash of the global element position (plane, row, col)
    and the seed, so it is deterministic, i.i.d. across tiles, and lowers on
    both the Mosaic TPU backend and the interpreter (no pltpu.prng_*).
    """
    if dropout_p <= 0.0:
        return x
    if dropout_p >= 1.0:
        return jnp.zeros_like(x)
    r = (lax.broadcasted_iota(jnp.int32, x.shape, 0) + row0).astype(jnp.uint32)
    c = (lax.broadcasted_iota(jnp.int32, x.shape, 1) + col0).astype(jnp.uint32)
    p = jnp.asarray(plane, jnp.int32).astype(jnp.uint32)
    h = (p * jnp.uint32(0x9E3779B1)
         + r * jnp.uint32(0x85EBCA77)
         + c * jnp.uint32(0xC2B2AE3D)
         + jnp.uint32(int(seed) & _U32_MAX))
    h = _fmix32(h)
    threshold = jnp.uint32(min(int(round(dropout_p * float(1 << 32))), _U32_MAX))
    keep = h >= threshold
    return jnp.where(keep, x * (1.0 / (1.0 - dropout_p)), jnp.zeros_like(x))


# ---------------------------------------------------------------------------
# Kernel A: q-tiled, exact softmax, returns both scores and attention weights.
# ---------------------------------------------------------------------------
def _sdpa_qtiled_kernel(q_ref, k_ref, v_ref, scores_ref, attn_ref, *,
                        scale, dropout_p, seed, mm_precision):
    # blocks: q/scores (1, tq, D); k/v (1, S, D); attn (1, tq, S)
    q = q_ref[0] * scale            # scale folded into the small (tq, D) tile
    k = k_ref[0]
    v = v_ref[0]

    # logits: contract last dim of q with last dim of k (no k.T relayout);
    # operands stay in the input dtype, accumulation in f32 on the MXU.
    s = lax.dot_general(q, k, dimension_numbers=(((1,), (1,)), ((), ())),
                        preferred_element_type=jnp.float32,
                        precision=mm_precision)                    # (tq, S) f32

    attn = _softmax_rows(s)
    tq = attn.shape[0]
    attn = _apply_dropout(attn, dropout_p, seed,
                          plane=pl.program_id(0),
                          row0=pl.program_id(1) * tq,
                          col0=0)

    attn_ref[0] = attn.astype(attn_ref.dtype)                     # post-dropout

    p = attn.astype(v.dtype)                                       # MXU-friendly
    scores = jnp.dot(p, v, preferred_element_type=jnp.float32,
                     precision=mm_precision)                       # (tq, D)
    scores_ref[0] = scores.astype(scores_ref.dtype)


# ---------------------------------------------------------------------------
# Kernel B: flash-style online softmax, scores only (attn never materialized).
# ---------------------------------------------------------------------------
def _sdpa_flash_kernel(q_ref, k_ref, v_ref, o_ref, m_sc, l_sc, acc_sc, *,
                       scale, dropout_p, seed, mm_precision):
    kv = pl.program_id(2)

    @pl.when(kv == 0)
    def _():
        m_sc[...] = jnp.full_like(m_sc, -jnp.inf)
        l_sc[...] = jnp.zeros_like(l_sc)
        acc_sc[...] = jnp.zeros_like(acc_sc)

    q = q_ref[0] * scale            # (tq, D)
    k = k_ref[0]                    # (tk, D)
    v = v_ref[0]                    # (tk, D)

    s = lax.dot_general(q, k, dimension_numbers=(((1,), (1,)), ((), ())),
                        preferred_element_type=jnp.float32,
                        precision=mm_precision)                    # (tq, tk) f32

    m_prev = m_sc[...]
    m_new = jnp.maximum(m_prev, jnp.max(s, axis=-1, keepdims=True))
    alpha = jnp.exp(m_prev - m_new)
    p = jnp.exp(s - m_new)                                         # unnormalized

    # denominator uses the *un-dropped* probs (torch applies dropout after the
    # softmax normalization); dropout only masks the numerator accumulation.
    l_sc[...] = alpha * l_sc[...] + jnp.sum(p, axis=-1, keepdims=True)

    tq, tk = p.shape
    pv = _apply_dropout(p, dropout_p, seed,
                        plane=pl.program_id(0),
                        row0=pl.program_id(1) * tq,
                        col0=kv * tk)
    acc_sc[...] = alpha * acc_sc[...] + jnp.dot(
        pv.astype(v.dtype), v, preferred_element_type=jnp.float32,
        precision=mm_precision)
    m_sc[...] = m_new

    @pl.when(kv == pl.num_programs(2) - 1)
    def _():
        o_ref[0] = (acc_sc[...] * _accurate_reciprocal(l_sc[...])
                    ).astype(o_ref.dtype)


# ---------------------------------------------------------------------------
# Wrapper
# ---------------------------------------------------------------------------
def scaled_dot_product_attention(q, k, v, *, scale, attn_drop=0.0, seed=0,
                                 return_attn=True, q_tile=128, kv_tile=128):
    """q, k, v: [B, H, S, D].

    return_attn=True  -> (scores [B,H,S,D], attn [B,H,S,S])  (torch contract)
    return_attn=False -> scores only, via the flash-style kernel.
    """
    B, H, S, D = q.shape
    assert k.shape == (B, H, S, D) and v.shape == (B, H, S, D)
    BH = B * H
    qf = q.reshape(BH, S, D)
    kf = k.reshape(BH, S, D)
    vf = v.reshape(BH, S, D)

    tq = _pick_tile(S, q_tile)
    nq = S // tq
    itm = q.dtype.itemsize
    # bf16 inputs: fast MXU path.  f32 inputs: full-precision matmul passes.
    mm_precision = (lax.Precision.HIGHEST if q.dtype == jnp.float32
                    else lax.Precision.DEFAULT)

    if return_attn:
        kernel = functools.partial(_sdpa_qtiled_kernel, scale=float(scale),
                                   dropout_p=float(attn_drop), seed=int(seed),
                                   mm_precision=mm_precision)
        # rough working set: double-buffered blocks + f32 temporaries
        est = (2 * (2 * tq * D + 2 * S * D) * itm    # q, scores, k, v blocks
               + 2 * tq * S * itm                    # attn block
               + 4 * tq * S * 4)                     # f32 temps (s, e, attn, mask)
        scores, attn = pl.pallas_call(
            kernel,
            out_shape=(
                jax.ShapeDtypeStruct((BH, S, D), q.dtype),   # scores
                jax.ShapeDtypeStruct((BH, S, S), q.dtype),   # attn (post-dropout)
            ),
            grid=(BH, nq),
            in_specs=[
                pl.BlockSpec((1, tq, D), lambda b, i: (b, i, 0)),
                pl.BlockSpec((1, S, D), lambda b, i: (b, 0, 0)),
                pl.BlockSpec((1, S, D), lambda b, i: (b, 0, 0)),
            ],
            out_specs=(
                pl.BlockSpec((1, tq, D), lambda b, i: (b, i, 0)),
                pl.BlockSpec((1, tq, S), lambda b, i: (b, i, 0)),
            ),
            compiler_params=pltpu.CompilerParams(
                dimension_semantics=("parallel", "parallel"),
                vmem_limit_bytes=_vmem_limit(est)),
        )(qf, kf, vf)
        return scores.reshape(B, H, S, D), attn.reshape(B, H, S, S)

    # flash path: scores only
    tk = _pick_tile(S, kv_tile)
    nk = S // tk
    kernel = functools.partial(_sdpa_flash_kernel, scale=float(scale),
                               dropout_p=float(attn_drop), seed=int(seed),
                               mm_precision=mm_precision)
    est = (2 * (2 * tq * D + 2 * tk * D) * itm       # q, o, k, v blocks
           + (tq * D + 2 * tq) * 4                   # f32 scratch acc/m/l
           + 3 * tq * tk * 4)                        # f32 temps
    scores = pl.pallas_call(
        kernel,
        out_shape=jax.ShapeDtypeStruct((BH, S, D), q.dtype),
        grid=(BH, nq, nk),
        in_specs=[
            pl.BlockSpec((1, tq, D), lambda b, i, j: (b, i, 0)),
            pl.BlockSpec((1, tk, D), lambda b, i, j: (b, j, 0)),
            pl.BlockSpec((1, tk, D), lambda b, i, j: (b, j, 0)),
        ],
        out_specs=pl.BlockSpec((1, tq, D), lambda b, i, j: (b, i, 0)),
        scratch_shapes=[
            pltpu.VMEM((tq, 1), jnp.float32),    # running max m
            pltpu.VMEM((tq, 1), jnp.float32),    # running sum l
            pltpu.VMEM((tq, D), jnp.float32),    # output accumulator
        ],
        compiler_params=pltpu.CompilerParams(
            dimension_semantics=("parallel", "parallel", "arbitrary"),
            vmem_limit_bytes=_vmem_limit(est)),
    )(qf, kf, vf)
    return scores.reshape(B, H, S, D)


def _reference(q, k, v, scale):
    s = jnp.einsum("bhqd,bhkd->bhqk", q.astype(jnp.float32),
                   k.astype(jnp.float32), precision="highest") * scale
    attn = jax.nn.softmax(s, axis=-1)
    scores = jnp.einsum("bhqk,bhkd->bhqd", attn, v.astype(jnp.float32),
                        precision="highest")
    return scores, attn


if __name__ == "__main__":
    root = jax.random.PRNGKey(0)
    key1, key2 = jax.random.split(root, 2)

    # ---- test 1: small f32, exact path (the module's default contract) ----
    B, H, S, D = 2, 4, 8, 32
    scale = D ** -0.5
    kq, kk, kv = jax.random.split(key1, 3)
    q1 = jax.random.normal(kq, (B, H, S, D), dtype=jnp.float32)
    k1 = jax.random.normal(kk, (B, H, S, D), dtype=jnp.float32)
    v1 = jax.random.normal(kv, (B, H, S, D), dtype=jnp.float32)

    scores, attn = scaled_dot_product_attention(q1, k1, v1, scale=scale,
                                                attn_drop=0.0)
    scores = jax.block_until_ready(scores)
    attn = jax.block_until_ready(attn)
    ref_scores, ref_attn = _reference(q1, k1, v1, scale)
    assert scores.shape == (B, H, S, D) and attn.shape == (B, H, S, S)
    assert jnp.allclose(scores, ref_scores, atol=1e-3, rtol=1e-3)
    assert jnp.allclose(attn, ref_attn, atol=1e-3, rtol=1e-3)

    # ---- test 2: bf16 with q-tiling (S=256 -> tq=128, 2 q-tiles per head) ----
    B2, H2, S2, D2 = 1, 2, 256, 64
    scale2 = D2 ** -0.5
    kq2, kk2, kv2 = jax.random.split(key2, 3)
    q2 = jax.random.normal(kq2, (B2, H2, S2, D2), dtype=jnp.bfloat16)
    k2 = jax.random.normal(kk2, (B2, H2, S2, D2), dtype=jnp.bfloat16)
    v2 = jax.random.normal(kv2, (B2, H2, S2, D2), dtype=jnp.bfloat16)

    s2, a2 = scaled_dot_product_attention(q2, k2, v2, scale=scale2, attn_drop=0.0)
    s2 = jax.block_until_ready(s2)
    r_s2, r_a2 = _reference(q2, k2, v2, scale2)
    assert jnp.allclose(s2.astype(jnp.float32), r_s2, atol=3e-2, rtol=3e-2)
    assert jnp.allclose(a2.astype(jnp.float32), r_a2, atol=3e-2, rtol=3e-2)

    # ---- test 3: flash path (return_attn=False), same bf16 inputs ----
    s3 = scaled_dot_product_attention(q2, k2, v2, scale=scale2, attn_drop=0.0,
                                      return_attn=False)
    s3 = jax.block_until_ready(s3)
    assert s3.shape == (B2, H2, S2, D2)
    assert jnp.allclose(s3.astype(jnp.float32), r_s2, atol=3e-2, rtol=3e-2)

    # ---- test 4: dropout smoke test (p = 0.3), f32 ----
    B4, H4, S4, D4 = 1, 2, 128, 32
    scale4 = D4 ** -0.5
    kq4, kk4, kv4 = jax.random.split(jax.random.PRNGKey(1), 3)
    q4 = jax.random.normal(kq4, (B4, H4, S4, D4), dtype=jnp.float32)
    k4 = jax.random.normal(kk4, (B4, H4, S4, D4), dtype=jnp.float32)
    v4 = jax.random.normal(kv4, (B4, H4, S4, D4), dtype=jnp.float32)

    p_drop = 0.3
    s4, a4 = scaled_dot_product_attention(q4, k4, v4, scale=scale4,
                                          attn_drop=p_drop, seed=123)
    s4 = jax.block_until_ready(s4)
    a4 = jax.block_until_ready(a4)
    _, r_a4 = _reference(q4, k4, v4, scale4)

    dropped = float(jnp.mean((a4 == 0.0).astype(jnp.float32)))
    assert 0.25 < dropped < 0.35, dropped            # ~Bernoulli(0.3) over 32k samples
    kept = a4 != 0.0                                 # kept weights = softmax / (1-p)
    assert jnp.allclose(jnp.where(kept, a4, 0.0),
                        jnp.where(kept, r_a4 / (1.0 - p_drop), 0.0),
                        atol=1e-3, rtol=1e-3)
    # scores are consistent with the returned (post-dropout) attention weights
    s4_from_attn = jnp.einsum("bhqk,bhkd->bhqd", a4, v4, precision="highest")
    assert jnp.allclose(s4, s4_from_attn, atol=1e-3, rtol=1e-3)

    print("KERNEL_OK")
</pallas_src>

<mosaic_0001>
module attributes {stable_mosaic.version = 11 : i64} {
  func.func @_sdpa_qtiled_kernel(%arg0: i32, %arg1: i32, %arg2: memref<1x8x32xf32, #tpu.memory_space<vmem>>, %arg3: memref<1x8x32xf32, #tpu.memory_space<vmem>>, %arg4: memref<1x8x32xf32, #tpu.memory_space<vmem>>, %arg5: memref<1x8x32xf32, #tpu.memory_space<vmem>>, %arg6: memref<1x8x8xf32, #tpu.memory_space<vmem>>) attributes {dimension_semantics = [#tpu.dimension_semantics<parallel>, #tpu.dimension_semantics<parallel>], iteration_bounds = array<i64: 8, 1>, scalar_prefetch = 0 : i64, scratch_operands = 0 : i64, tpu.core_type = #tpu.core_type<tc>, window_params = [{transform_indices = @transform_0, window_bounds = array<i64: 1, 8, 32>}, {transform_indices = @transform_1, window_bounds = array<i64: 1, 8, 32>}, {transform_indices = @transform_2, window_bounds = array<i64: 1, 8, 32>}, {transform_indices = @transform_3, window_bounds = array<i64: 1, 8, 32>}, {transform_indices = @transform_4, window_bounds = array<i64: 1, 8, 8>}]} {
    %c0 = arith.constant 0 : index
    %c0_0 = arith.constant 0 : index
    %c0_1 = arith.constant 0 : index
    %0 = vector.load %arg2[%c0, %c0_0, %c0_1] : memref<1x8x32xf32, #tpu.memory_space<vmem>>, vector<1x8x32xf32>
    %1 = vector.shape_cast %0 : vector<1x8x32xf32> to vector<8x32xf32>
    %cst = arith.constant 0.176776692 : f32
    %2 = vector.broadcast %cst : f32 to vector<8x32xf32>
    %3 = arith.mulf %1, %2 : vector<8x32xf32>
    %c0_2 = arith.constant 0 : index
    %c0_3 = arith.constant 0 : index
    %c0_4 = arith.constant 0 : index
    %4 = vector.load %arg3[%c0_2, %c0_3, %c0_4] : memref<1x8x32xf32, #tpu.memory_space<vmem>>, vector<1x8x32xf32>
    %5 = vector.shape_cast %4 : vector<1x8x32xf32> to vector<8x32xf32>
    %c0_5 = arith.constant 0 : index
    %c0_6 = arith.constant 0 : index
    %c0_7 = arith.constant 0 : index
    %6 = vector.load %arg4[%c0_5, %c0_6, %c0_7] : memref<1x8x32xf32, #tpu.memory_space<vmem>>, vector<1x8x32xf32>
    %7 = vector.shape_cast %6 : vector<1x8x32xf32> to vector<8x32xf32>
    %cst_8 = arith.constant dense<0.000000e+00> : vector<8x8xf32>
    %8 = tpu.matmul %3, %5, %cst_8 {dimension_numbers = #tpu.dot_dimension_numbers<[1], [1], [0], [0], [0, 0, 1, 0], [], []>, precision = #tpu.contract_precision<fp32>} : vector<8x32xf32>, vector<8x32xf32>, vector<8x8xf32> -> vector<8x8xf32>
    %cst_9 = arith.constant dense<0xFF800000> : vector<8xf32>
    %9 = vector.multi_reduction <maximumf>, %8, %cst_9 [1] : vector<8x8xf32> to vector<8xf32>
    %10 = vector.shape_cast %9 : vector<8xf32> to vector<8x1xf32>
    %11 = vector.broadcast %10 : vector<8x1xf32> to vector<8x8xf32>
    %12 = arith.subf %8, %11 : vector<8x8xf32>
    %13 = math.exp %12 : vector<8x8xf32>
    %cst_10 = arith.constant dense<0.000000e+00> : vector<8xf32>
    %14 = vector.multi_reduction <add>, %13, %cst_10 [1] : vector<8x8xf32> to vector<8xf32>
    %15 = vector.shape_cast %14 : vector<8xf32> to vector<8x1xf32>
    %16 = tpu.reciprocal %15 {approx = true} : vector<8x1xf32> -> vector<8x1xf32>
    %17 = arith.mulf %15, %16 : vector<8x1xf32>
    %cst_11 = arith.constant 2.000000e+00 : f32
    %18 = vector.broadcast %cst_11 : f32 to vector<8x1xf32>
    %19 = arith.subf %18, %17 : vector<8x1xf32>
    %20 = arith.mulf %16, %19 : vector<8x1xf32>
    %21 = arith.mulf %15, %20 : vector<8x1xf32>
    %cst_12 = arith.constant 2.000000e+00 : f32
    %22 = vector.broadcast %cst_12 : f32 to vector<8x1xf32>
    %23 = arith.subf %22, %21 : vector<8x1xf32>
    %24 = arith.mulf %20, %23 : vector<8x1xf32>
    %25 = vector.broadcast %24 : vector<8x1xf32> to vector<8x8xf32>
    %26 = arith.mulf %13, %25 : vector<8x8xf32>
    %c0_13 = arith.constant 0 : index
    %c0_14 = arith.constant 0 : index
    %c0_15 = arith.constant 0 : index
    %27 = vector.load %arg6[%c0_13, %c0_14, %c0_15] : memref<1x8x8xf32, #tpu.memory_space<vmem>>, vector<1x8x8xf32>
    %28 = vector.shape_cast %27 : vector<1x8x8xf32> to vector<8x8xf32>
    %29 = vector.shape_cast %26 : vector<8x8xf32> to vector<1x8x8xf32>
    tpu.vector_store %arg6[%c0_13, %c0_14, %c0_15], %29 {strides = array<i32>} : memref<1x8x8xf32, #tpu.memory_space<vmem>>, vector<1x8x8xf32>,
    %cst_16 = arith.constant dense<0.000000e+00> : vector<8x32xf32>
    %30 = tpu.matmul %26, %7, %cst_16 {dimension_numbers = #tpu.dot_dimension_numbers<[1], [0], [0], [1], [0, 0, 1, 1], [], []>, precision = #tpu.contract_precision<fp32>} : vector<8x8xf32>, vector<8x32xf32>, vector<8x32xf32> -> vector<8x32xf32>
    %c0_17 = arith.constant 0 : index
    %c0_18 = arith.constant 0 : index
    %c0_19 = arith.constant 0 : index
    %31 = vector.load %arg5[%c0_17, %c0_18, %c0_19] : memref<1x8x32xf32, #tpu.memory_space<vmem>>, vector<1x8x32xf32>
    %32 = vector.shape_cast %31 : vector<1x8x32xf32> to vector<8x32xf32>
    %33 = vector.shape_cast %30 : vector<8x32xf32> to vector<1x8x32xf32>
    tpu.vector_store %arg5[%c0_17, %c0_18, %c0_19], %33 {strides = array<i32>} : memref<1x8x32xf32, #tpu.memory_space<vmem>>, vector<1x8x32xf32>,
    return
  }
  func.func @transform_0(%arg0: i32, %arg1: i32) -> (i32, i32, i32) {
    %c0_i32 = arith.constant 0 : i32
    %c0_i32_0 = arith.constant 0 : i32
    return %arg0, %arg1, %c0_i32 : i32, i32, i32
  }
  func.func @transform_1(%arg0: i32, %arg1: i32) -> (i32, i32, i32) {
    %c0_i32 = arith.constant 0 : i32
    %c0_i32_0 = arith.constant 0 : i32
    %c0_i32_1 = arith.constant 0 : i32
    return %arg0, %c0_i32, %c0_i32_0 : i32, i32, i32
  }
  func.func @transform_2(%arg0: i32, %arg1: i32) -> (i32, i32, i32) {
    %c0_i32 = arith.constant 0 : i32
    %c0_i32_0 = arith.constant 0 : i32
    %c0_i32_1 = arith.constant 0 : i32
    return %arg0, %c0_i32, %c0_i32_0 : i32, i32, i32
  }
  func.func @transform_3(%arg0: i32, %arg1: i32) -> (i32, i32, i32) {
    %c0_i32 = arith.constant 0 : i32
    %c0_i32_0 = arith.constant 0 : i32
    return %arg0, %arg1, %c0_i32 : i32, i32, i32
  }
  func.func @transform_4(%arg0: i32, %arg1: i32) -> (i32, i32, i32) {
    %c0_i32 = arith.constant 0 : i32
    %c0_i32_0 = arith.constant 0 : i32
    return %arg0, %arg1, %c0_i32 : i32, i32, i32
  }
}

</mosaic_0001>

<bundles_post_ra>
// kernel: tpu_custom_call.1
= control target key start
LH: loop header
LB: loop body
LE: loop exit
PB: predicated region body
PF: predicated region fallthrough
CT: control target
= control target key end

     0   :  { %s2218_s0 = inlined_call_operand.hbm [shape: f32[8,8,32], index: 0, kind: input, shape index: {}]   ;;  %s2219_s1 = inlined_call_operand.hbm [shape: f32[8,8,32], index: 1, kind: input, shape index: {}]   ;;  %s2220_s2 = inlined_call_operand.hbm [shape: f32[8,8,32], index: 2, kind: input, shape index: {}]   ;;  %s2221_s3 = inlined_call_operand.hbm [shape: f32[8,8,32], index: 3, kind: output, shape index: {0}]   ;;  %s2222_s4 = inlined_call_operand.hbm [shape: f32[8,8,8], index: 4, kind: output, shape index: {1}]  }
   0x1   :  { %2230 = sst [smem:[#allocation19_spill]] %s2219_s1 }
   0x2   :  { %10 = vsyncpa [#allocation3], 0 }
   0x3   :  { %12 = vsyncpa [#allocation3 + $0x1], 0 }
   0x4   :  { %13 = vsyncpa [#allocation6], 0 }
   0x5   :  { %15 = vsyncpa [#allocation6 + $0x1], 0 }
   0x6   :  { %16 = vsyncpa [#allocation4], 0 }
   0x7   :  { %18 = vsyncpa [#allocation4 + $0x1], 0 }
   0x8   :  { %19 = vsyncpa [#allocation10], 0 }
   0x9   :  { %21 = vsyncpa [#allocation10 + $0x1], 0  ;;  %s1881_s15 = smov 0   ;;  %s1883_s16 = smov 0  }
   0xa   :  { %s1885_s17 = smov 0   ;;  %s1887_s18 = smov 0  }
   0xb   :  { %s1889_s19 = smov 0   ;;  %s1891_s20 = smov 0  }
   0xc LB: > { %2231 = sst [smem:[#allocation15_spill]] %s1843_s19  ;;  %s1912_s21 = sadd.s32 4294967295, %s1847_s20   ;;  %s1847_s20 = sphi %s1891_s20, %s27_s20   ;;  %s1843_s19 = sphi %s1889_s19, %s2254_s19   ;;  %s1839_s18 = sphi %s1887_s18, %s2253_s18   ;;  %s1835_s17 = sphi %s1885_s17, %s2257_s17   ;;  %s1831_s16 = sphi %s1883_s16, %s2256_s16   ;;  %s1827_s15 = sphi %s1881_s15, %s2255_s15  }
   0xd   : > { %s1431_s22 = sadd.s32 4294967294, %s1847_s20   ;;  %s39_s23 = sadd.s32 1, %s1843_s19 }
   0xe   : > { %s48_s24 = sadd.s32 1, %s1835_s17  ;;  %p41_p0 = scmp.ge.s32.totalorder %s39_s23, 8 }
   0xf   : > { %p55_p1 = scmp.ne.s32.totalorder %s1835_s17, %s1831_s16  ;;  %p56_p2 = scmp.eq.s32.totalorder %s1847_s20, 0 }
  0x10   : > { %p61_p3 = scmp.ne.s32.totalorder %s1831_s16, %s1827_s15  ;;  %s2259_s23 = smov (%p41_p0, %s39_s23), 0 }
  0x11   : > { %2232 = sst [smem:[#allocation16_spill]] %s2259_s23  ;;  %p1924_p4 = por %p56_p2, %p55_p1 }
  0x12   : > { %p62_p5 = scmp.eq.s32.totalorder %s1912_s21, 0  ;;  %s43_s26 = ssub.s32 %s1843_s19, %s2259_s23 }
  0x13   : > { %p139_p6 = scmp.eq.s32.totalorder %s1912_s21, 7  ;;  %p46_p7 = scmp.eq.s32.totalorder %s43_s26, 0 }
  0x14   : > { %p1932_p8 = por %p62_p5, %p61_p3  ;;  %p145_p10 = scmp.eq.s32.totalorder %s1431_s22, 7 }
  0x15   : > { %p1936_p9 = por %p139_p6, %p55_p1  ;;  %p1583_p12 = scmp.lt.s32.totalorder %s1847_s20, 8 }
  0x16   : > { %s2234_s27 = scalar_select %p1932_p8, 1, 0 }
  0x17   : > { %s2235_s28 = scalar_select %p1936_p9, 1, 0 }
  0x18   : > { %s1941_s29 = scalar_select %p46_p7, %s1835_s17, %s48_s24  }
  0x19   : > { %p1943_p11 = por %p145_p10, %p61_p3  ;;  %s2223_s5 = sand.u32 1, %s1835_s17  }
  0x1a   : > { %2236 = sst [smem:[#allocation17_spill]] %s1941_s29  ;;  %s1951_s6 = sshll.u32 %s2223_s5, 3 }
  0x1b   : > { %s2237_s30 = scalar_select %p1943_p11, 1, 0 }
  0x1c   : > { %s1954_s7 = sshll.u32 %s1843_s19, 7  ;;  %p1958_p13 = pnand %p1583_p12, %p1924_p4 }
  0x1d   : > { %2238 = sst [smem:[#allocation18_spill]] %s2237_s30  ;;  %s212_s9 = sand.u32 1, %s1847_s20  }
  0x1e   : > { %s2239_s8 = scalar_select %p1958_p13, 1, 0 }
  0x1f   : > { %s2240_s1 = sld [smem:[#allocation19_spill]]  ;;  %s216_s13 = scalar_lea.vmem [#allocation5], %s1951_s6 }
  0x20   : > { %s223_s14 = sshll.u32 %s216_s13, 4  ;;  %s1974_s22 = scalar_lea.sflag [#allocation6], %s212_s9  ;;  %s1971_s14 = int_to_ptr.vmem [resolvable:$true] %s223_s14 }
  0x21   : > { %p1980_p3 = pneg %p1958_p13 }
  0x25   : > { %s1967_s12 = scalar_lea.hbm %s2240_s1, %s1954_s7  ;;  %s1644_s11 = scalar_lea.hbm %s2240_s1, 1024 }
  0x26   : > { %s1639_s24 = scalar_lea.hbm %s1967_s12, 128  ;;  %p1645_p6 = scmp.lt.u32.totalorder %s1967_s12, %s2240_s1 }
  0x27   : > { %p1640_p2 = scmp.ne.s32.totalorder %s1967_s12, %s1639_s24  ;;  %p1646_p7 = scmp.lt.u32.totalorder %s1644_s11, %s1639_s24 }
  0x28   : > { %p1648_p12 = scmp.lt.u32.totalorder %s1639_s24, %s1967_s12 }
  0x29   : > { %p1642_p4 = pnand %p1980_p3, %p1640_p2  ;;  %p1647_p10 = por %p1646_p7, %p1645_p6 }
  0x2b   : > { %p1643_p5 = pneg %p1642_p4  ;;  %p1649_p0 = por %p1648_p12, %p1647_p10 }
  0x2d   : > { %p1650_p1 = pnand %p1649_p0, %p1643_p5 }
  0x2f   : > { %1653 = shalt.err (!%p1650_p1)
}
  0x30   : > { %s1654_s9 = scalar_lea.vmem %s1971_s14, 128  ;;  %s1849_s26 = smov [#allocation5]  }
  0x31   : > { %p1655_p2 = scmp.ne.s32.totalorder %s1971_s14, %s1654_s9  ;;  %s1659_s10 = sshll.u32 %s1849_s26, 4  ;;  %s1660_s10 = int_to_ptr.vmem [resolvable:$false] %s1659_s10 }
  0x32   : > { %s1661_s5 = scalar_lea.vmem %s1660_s10, 256  ;;  %p1662_p9 = scmp.lt.s32.totalorder %s1971_s14, %s1660_s10 }
  0x33   : > { %p1657_p4 = pnand %p1655_p2, %p1980_p3  ;;  %p1663_p8 = scmp.lt.s32.totalorder %s1661_s5, %s1654_s9 }
  0x35   : > { %p1658_p11 = pneg %p1657_p4  ;;  %p1664_p6 = por %p1663_p8, %p1662_p9 }
  0x37   : > { %p1665_p7 = pnand %p1664_p6, %p1658_p11 }
  0x39   : > { %1668 = shalt.err (!%p1665_p7)
}
  0x3a   : > { %1572 = dma.hbm_to_vmem [thread:$0]  (!%p1958_p13), %s1967_s12, 128, %s1971_s14, %s1974_s22  }
  0x3b   : > { %p2242_p0 = scmp.lt.s32.totalorder %s1847_s20, 9  ;;  %p2243_p1 = scmp.ge.s32.totalorder %s1847_s20, 1 }
  0x3c   : > { %s2016_s9 = scalar_lea.hbm %s2218_s0, %s1954_s7  ;;  %s197_s26 = scalar_lea.vmem [#allocation2], %s1951_s6 }
  0x3d   : > { %p2008_p5 = pnand %p2243_p1, %p2242_p0  ;;  %s205_s10 = sshll.u32 %s197_s26, 4  ;;  %s2019_s10 = int_to_ptr.vmem [resolvable:$true] %s205_s10 }
  0x3e   : > { %s2025_s5 = scalar_lea.hbm %s2220_s2, %s1954_s7  ;;  %s2245_s1 = sand.u32 1, %s1835_s17  }
  0x3f   : > { %s2244_s24 = scalar_select %p2008_p5, 1, 0 }
  0x40   : > { %s194_s23 = scalar_lea.sflag [#allocation3], %s2245_s1  ;;  %s1669_s19 = scalar_lea.hbm %s2016_s9, 128 }
  0x41   : > { %p1670_p8 = scmp.ne.s32.totalorder %s2016_s9, %s1669_s19  ;;  %s1674_s29 = scalar_lea.hbm %s2218_s0, 1024 }
  0x42   : > { %p1675_p10 = scmp.lt.u32.totalorder %s2016_s9, %s2218_s0  ;;  %p1676_p12 = scmp.lt.u32.totalorder %s1674_s29, %s1669_s19 }
  0x43   : > { %p1672_p9 = pnand %p1670_p8, %p1980_p3  ;;  %p1678_p4 = scmp.lt.u32.totalorder %s1669_s19, %s2016_s9 }
  0x44   : > { %p1677_p2 = por %p1676_p12, %p1675_p10 }
  0x45   : > { %p1673_p11 = pneg %p1672_p9 }
  0x46   : > { %p1679_p6 = por %p1678_p4, %p1677_p2 }
  0x48   : > { %p1680_p7 = pnand %p1679_p6, %p1673_p11 }
  0x4a   : > { %1683 = shalt.err (!%p1680_p7)
}
  0x4b   : > { %s1684_s1 = scalar_lea.vmem %s2019_s10, 128  ;;  %s1850_s7 = smov [#allocation2]  }
  0x4c   : > { %p1685_p0 = scmp.ne.s32.totalorder %s2019_s10, %s1684_s1  ;;  %s1689_s12 = sshll.u32 %s1850_s7, 4  ;;  %s1690_s12 = int_to_ptr.vmem [resolvable:$false] %s1689_s12 }
  0x4d   : > { %s1691_s30 = scalar_lea.vmem %s1690_s12, 256  ;;  %p1692_p9 = scmp.lt.s32.totalorder %s2019_s10, %s1690_s12 }
  0x4e   : > { %p1687_p1 = pnand %p1685_p0, %p1980_p3  ;;  %p1693_p5 = scmp.lt.s32.totalorder %s1691_s30, %s1684_s1 }
  0x50   : > { %p1688_p8 = pneg %p1687_p1  ;;  %p1694_p10 = por %p1693_p5, %p1692_p9 }
  0x52   : > { %p1695_p12 = pnand %p1694_p10, %p1688_p8 }
  0x54   : > { %1698 = shalt.err (!%p1695_p12)
}
  0x55   : > { %1569 = dma.hbm_to_vmem [thread:$0]  (!%p1958_p13), %s2016_s9, 128, %s2019_s10, %s194_s23  }
  0x56   : > { %s234_s19 = scalar_lea.vmem [#allocation7], %s1951_s6  ;;  %s1699_s14 = scalar_lea.hbm %s2025_s5, 128 }
  0x57   : > { %s241_s29 = sshll.u32 %s234_s19, 4  ;;  %p1700_p11 = scmp.ne.s32.totalorder %s2025_s5, %s1699_s14  ;;  %s242_s29 = int_to_ptr.vmem [resolvable:$true] %s241_s29 }
  0x58   : > { %s1704_s26 = scalar_lea.hbm %s2220_s2, 1024  ;;  %p1705_p4 = scmp.lt.u32.totalorder %s2025_s5, %s2220_s2 }
  0x59   : > { %p1702_p5 = pnand %p1700_p11, %p1980_p3  ;;  %p1706_p6 = scmp.lt.u32.totalorder %s1704_s26, %s1699_s14 }
  0x5a   : > { %p1708_p0 = scmp.lt.u32.totalorder %s1699_s14, %s2025_s5 }
  0x5b   : > { %p1703_p2 = pneg %p1702_p5  ;;  %p1707_p7 = por %p1706_p6, %p1705_p4 }
  0x5d   : > { %p1709_p1 = por %p1708_p0, %p1707_p7 }
  0x5f   : > { %p1710_p8 = pnand %p1709_p1, %p1703_p2 }
  0x61   : > { %1713 = shalt.err (!%p1710_p8)
}
  0x62   : > { %s1714_s23 = scalar_lea.vmem %s242_s29, 128  ;;  %s1851_s6 = smov [#allocation7]  }
  0x63   : > { %p1715_p9 = scmp.ne.s32.totalorder %s242_s29, %s1714_s23  ;;  %s1719_s9 = sshll.u32 %s1851_s6, 4  ;;  %s1720_s9 = int_to_ptr.vmem [resolvable:$false] %s1719_s9 }
  0x64   : > { %s1721_s10 = scalar_lea.vmem %s1720_s9, 256  ;;  %p1722_p11 = scmp.lt.s32.totalorder %s242_s29, %s1720_s9 }
  0x65   : > { %p1717_p10 = pnand %p1715_p9, %p1980_p3  ;;  %p1723_p5 = scmp.lt.s32.totalorder %s1721_s10, %s1714_s23 }
  0x67   : > { %p1718_p12 = pneg %p1717_p10  ;;  %p1724_p13 = por %p1723_p5, %p1722_p11 }
  0x69   : > { %p1725_p4 = pnand %p1724_p13, %p1718_p12 }
  0x6b   : > { %1728 = shalt.err (!%p1725_p4)
}
  0x6c   : > { %p2246_p6 = scmp.ne.s32.totalorder %s2239_s8, 0  ;;  %p2247_p2 = scmp.ne.s32.totalorder %s2244_s24, 0 }
  0x6d   : > { %s2072_s25 = sand.u32 (!%p2247_p2), 1, %s1831_s16   ;;  %p2248_p13 = scmp.ne.s32.totalorder (!%p2247_p2), %s2234_s27, 0 }
  0x6e   : > { %1575 = dma.hbm_to_vmem [thread:$0]  (!%p2246_p6), %s2025_s5, 128, %s242_s29, %s1974_s22  }
  0x6f   : > { %250 = sbr.rel (%p2247_p2) target bundleno = 991 (0x3df), region = 32  ;;  %s2075_s12 = sshll.u32 (!%p2247_p2), %s2072_s25, 3 }
  0x70   : > { %s253_s30 = scalar_lea.sflag (!%p2247_p2), [#allocation3], %s2072_s25  ;;  %s256_s19 = scalar_lea.vmem (!%p2247_p2), [#allocation2], %s2075_s12 }
  0x76   : > { %1810 = dma.done.wait (%p2248_p13), %s253_s30, 128  }
  0x77   : > { %1812 = vsyncadd (%p2248_p13), %s253_s30, 4294967168  ;;  %s261_s8 = sand.u32 1, %s1912_s21   ;;  %s265_s24 = scalar_lea.vmem [#allocation5], %s2075_s12 }
  0x78   : > { %s262_s22 = scalar_lea.sflag [#allocation6], %s261_s8 }
  0x79   : > { %1814 = dma.done.wait (%p2248_p13), %s262_s22, 256  }
  0x7a   : > { %1816 = vsyncadd (%p2248_p13), %s262_s22, 4294967040  ;;  %v1852_v0 = vmov 0.0   ;;  %vm1853_vm0 = vmmov 0   ;;  %v316_v1 = vld [vmem:[%s265_s24] sm:$0xff]  ;;  %vm318_vm1 = vcmask 261120   ;;  %v314_v2 = vld [vmem:[%s256_s19] sm:$0xff] }
  0x7b   : > { %1476 = vmatprep.subr.mxu0 %v1852_v0  ;;  %1478 = vmatprep.mubr.msk.f32.mxu0 %vm1853_vm0, %v1852_v0  ;;  %v323_v3 = vsel %vm318_vm1, %v316_v1, 0  ;;  %v315_v4 = vmul.f32 0.17677669, %v314_v2  ;;  %vm771_vm2 = vcmask 64512   ;;  %s274_s21 = scalar_lea.vmem [#allocation7], %s2075_s12  ;;  %s313_s27 = scalar_lea.vmem [#allocation9], %s2075_s12 }
  0x7c   : > { %1506 = vmatprep.subr.mxu1 %v1852_v0  ;;  %1508 = vmatprep.mubr.msk.f32.mxu1 %vm1853_vm0, %v1852_v0  ;;  %v326_v5 = vand.u32 4294901760, %v323_v3  ;;  %v317_v24 = vld [vmem:[%s274_s21] sm:$0xff]  ;;  %s1448_s5 = sshll.u32 %s1839_s18, 7  ;;  %s1274_s13 = sshll.u32 %s313_s27, 4  ;;  %s1275_s13 = int_to_ptr.vmem [resolvable:$true] %s1274_s13 }
  0x7d   : > { %v320_v6 = vsel %vm318_vm1, %v315_v4, 0  ;;  %v794_v25 = vand.u32 4294901760, %v317_v24  ;;  %s2141_s11 = scalar_lea.hbm %s2222_s4, %s1448_s5  ;;  %s1246_s26 = scalar_lea.sflag [#allocation10], %s2072_s25 }
  0x7e   : > { %1477 = vmatpush3.xpose.msra.mxu0 %v326_v5  ;;  %v403_v7 = vsub.f32 %v323_v3, %v326_v5  ;;  %v391_v8 = vand.u32 4294901760, %v320_v6  ;;  %s1729_s1 = scalar_lea.vmem %s1275_s13, 128  ;;  %p2249_p7 = scmp.ne.s32.totalorder %s2235_s28, 0 }
  0x7f   : > { %1481 = vmatprep.subr.mxu0 %v1852_v0  ;;  %1507 = vmatpush3.msra.mxu1 %v794_v25  ;;  %v871_v34 = vsub.f32 %v317_v24, %v794_v25  ;;  %p1730_p3 = scmp.ne.s32.totalorder %s1275_s13, %s1729_s1  ;;  %s1854_s7 = smov [#allocation9]  }
  0x80   : > { %v392_v9 = vsub.f32 %v320_v6, %v391_v8  ;;  %v404_v10 = vand.u32 4294901760, %v403_v7  ;;  %1511 = vmatprep.subr.mxu1 %v1852_v0  ;;  %s1733_s23 = sshll.u32 %s1854_s7, 4  ;;  %s1734_s23 = int_to_ptr.vmem [resolvable:$false] %s1733_s23 }
  0x81   : > { %v872_v37 = vand.u32 4294901760, %v871_v34  ;;  %p1731_p0 = pnand %p1730_p3, %p2249_p7  ;;  %s1735_s6 = scalar_lea.vmem %s1734_s23, 256 }
  0x82   : > { %v393_v11 = vand.u32 4294901760, %v392_v9  ;;  %v405_v12 = vsub.f32 %v403_v7, %v404_v10  ;;  %p1736_p8 = scmp.lt.s32.totalorder %s1275_s13, %s1734_s23  ;;  %p1737_p9 = scmp.lt.s32.totalorder %s1735_s6, %s1729_s1 }
  0x83   : > { %v873_v40 = vsub.f32 %v871_v34, %v872_v37  ;;  %p1732_p1 = pneg %p1731_p0 }
  0x84   : > { %v394_v13 = vsub.f32 %v392_v9, %v393_v11  ;;  %v406_v14 = vand.u32 4294901760, %v405_v12  ;;  %p1738_p10 = por %p1737_p9, %p1736_p8 }
  0x85   : > { %v874_v43 = vand.u32 4294901760, %v873_v40 }
  0x86   : > { %v395_v15 = vand.u32 4294901760, %v394_v13  ;;  %p1739_p12 = pnand %p1738_p10, %p1732_p1 }
  0x88   : > { %1479 = vmatmul.mubr.f32.vlgmr.msra.gmra.mrb[0].mxu0 %v395_v15 }
  0x89   : > { %1482 = vmatpush3.xpose.msra.mxu0 %v406_v14  ;;  %1483 = vmatprep.mubr.msk.f32.mxu0 %vm1853_vm0, %v1852_v0 }
  0x8a   : > { %1486 = vmatprep.subr.mxu0 %v1852_v0 }
  0x90   : > { %1484 = vmatmul.mubr.f32.vlgmr.msra.gmra.mrb[0].mxu0 %v391_v8 }
  0x91   : > { %1487 = vmatpush3.xpose.msra.mxu0 %v403_v7  ;;  %1488 = vmatprep.mubr.msk.f32.mxu0 %vm1853_vm0, %v1852_v0 }
  0x92   : > { %1491 = vmatprep.subr.mxu0 %v1852_v0 }
  0x98   : > { %1489 = vmatmul.mubr.f32.vlgmr.msra.gmra.mrb[0].mxu0 %v392_v9 }
  0x99   : > { %1492 = vmatpush3.xpose.msra.mxu0 %v326_v5  ;;  %1493 = vmatprep.mubr.msk.f32.mxu0 %vm1853_vm0, %v1852_v0 }
  0x9a   : > { %1496 = vmatprep.subr.mxu0 %v1852_v0 }
  0xa0   : > { %1494 = vmatmul.mubr.f32.vlgmr.msra.gmra.mrb[0].mxu0 %v393_v11 }
  0xa1   : > { %1497 = vmatpush3.xpose.msra.mxu0 %v404_v10  ;;  %1498 = vmatprep.mubr.msk.f32.mxu0 %vm1853_vm0, %v1852_v0 }
  0xa2   : > { %1501 = vmatprep.subr.mxu0 %v1852_v0 }
  0xa8   : > { %1499 = vmatmul.mubr.f32.vlgmr.msra.gmra.mrb[0].mxu0 %v391_v8 }
  0xa9   : > { %1502 = vmatpush3.xpose.msra.mxu0 %v326_v5  ;;  %1503 = vmatprep.mubr.msk.f32.mxu0 %vm1853_vm0, %v1852_v0 }
  0xb0   : > { %1504 = vmatmul.mubr.f32.vlgmr.msra.gmra.mrb[0].mxu0 %v391_v8 }
 0x183   : > { %v767_v16 = vpop.f32.mrb[0].mxu0 }
 0x184   : > { %v1505_v17 = vpop.f32.mrb[1].mxu0  ;;  %v772_v18 = vsel %vm771_vm2, %v767_v16, -inf }
 0x185   : > { %773 = vmax.xlane.f32.xlu0 %v772_v18 }
 0x212   : > { %v774_v19 = vpop.xlane.xlu0 %773 }
 0x213   : > { %v775_v20 = vsub.f32 %v767_v16, %v774_v19 }
 0x215   : > { %v776_v21 = vmul.f32 1.442695, %v775_v20 }
 0x217   : > { %1635 = vpow2.f32 %v776_v21 }
 0x221   : > { %v1636_v22 = vpop.eup %1635 }
 0x222   : > { %v778_v23 = vsel %vm771_vm2, %v1636_v22, 0.0 }
 0x223   : > { %779 = vadd.xlane.f32.xlu0 %v778_v23 }
 0x2b0   : > { %v780_v26 = vpop.xlane.xlu0 %779 }
 0x2b1   : > { %1637 = vrcp.f32 %v780_v26 }
 0x2bb   : > { %v1638_v27 = vpop.eup %1637 }
 0x2bc   : > { %v782_v28 = vmul.f32 %v1638_v27, %v780_v26 }
 0x2be   : > { %v783_v29 = vsub.f32 2.0, %v782_v28 }
 0x2c0   : > { %v784_v30 = vmul.f32 %v1638_v27, %v783_v29 }
 0x2c2   : > { %v785_v31 = vmul.f32 %v784_v30, %v780_v26 }
 0x2c4   : > { %v786_v32 = vsub.f32 2.0, %v785_v31 }
 0x2c6   : > { %v787_v33 = vmul.f32 %v786_v32, %v784_v30 }
 0x2c8   : > { %v788_v35 = vmul.f32 %v1636_v22, %v787_v33 }
 0x2ca   : > { %v791_v36 = vsel %vm771_vm2, %v788_v35, 0  ;;  %789 = vst.msk [vmem:[%s313_s27] sm:$0xff] %vm771_vm2, %v788_v35 }
 0x2cb   : > { %v859_v38 = vand.u32 4294901760, %v791_v36 }
 0x2cd   : > { %v860_v39 = vsub.f32 %v791_v36, %v859_v38 }
 0x2cf   : > { %v861_v41 = vand.u32 4294901760, %v860_v39 }
 0x2d1   : > { %v862_v42 = vsub.f32 %v860_v39, %v861_v41 }
 0x2d3   : > { %v863_v44 = vand.u32 4294901760, %v862_v42 }
 0x2d5   : > { %1509 = vmatmul.mubr.f32.vlgmr.msra.gmra.mrb[0].mxu1 %v863_v44 }
 0x2d6   : > { %1512 = vmatpush3.msra.mxu1 %v874_v43  ;;  %1513 = vmatprep.mubr.msk.f32.mxu1 %vm1853_vm0, %v1852_v0 }
 0x2d7   : > { %1516 = vmatprep.subr.mxu1 %v1852_v0 }
 0x2dd   : > { %1514 = vmatmul.mubr.f32.vlgmr.msra.gmra.mrb[0].mxu1 %v859_v38 }
 0x2de   : > { %1517 = vmatpush3.msra.mxu1 %v871_v34  ;;  %1518 = vmatprep.mubr.msk.f32.mxu1 %vm1853_vm0, %v1852_v0 }
 0x2df   : > { %1521 = vmatprep.subr.mxu1 %v1852_v0 }
 0x2e5   : > { %1519 = vmatmul.mubr.f32.vlgmr.msra.gmra.mrb[0].mxu1 %v860_v39 }
 0x2e6   : > { %1522 = vmatpush3.msra.mxu1 %v794_v25  ;;  %1523 = vmatprep.mubr.msk.f32.mxu1 %vm1853_vm0, %v1852_v0 }
 0x2e7   : > { %1526 = vmatprep.subr.mxu1 %v1852_v0 }
 0x2ed   : > { %1524 = vmatmul.mubr.f32.vlgmr.msra.gmra.mrb[0].mxu1 %v861_v41 }
 0x2ee   : > { %1527 = vmatpush3.msra.mxu1 %v872_v37  ;;  %1528 = vmatprep.mubr.msk.f32.mxu1 %vm1853_vm0, %v1852_v0 }
 0x2ef   : > { %1531 = vmatprep.subr.mxu1 %v1852_v0 }
 0x2f5   : > { %1529 = vmatmul.mubr.f32.vlgmr.msra.gmra.mrb[0].mxu1 %v859_v38 }
 0x2f6   : > { %1532 = vmatpush3.msra.mxu1 %v794_v25  ;;  %1533 = vmatprep.mubr.msk.f32.mxu1 %vm1853_vm0, %v1852_v0 }
 0x2fd   : > { %1534 = vmatmul.mubr.f32.vlgmr.msra.gmra.mrb[0].mxu1 %v859_v38 }
 0x2fe   : > { %1742 = shalt.err (!%p1739_p12)
}
 0x2ff   : > { %s1743_s9 = scalar_lea.hbm %s2141_s11, 128  ;;  %s1747_s19 = scalar_lea.hbm %s2222_s4, 1024 }
 0x300   : > { %p1744_p11 = scmp.ne.s32.totalorder %s2141_s11, %s1743_s9  ;;  %p1748_p6 = scmp.lt.u32.totalorder %s2141_s11, %s2222_s4 }
 0x301   : > { %p1749_p2 = scmp.lt.u32.totalorder %s1747_s19, %s1743_s9  ;;  %p1751_p3 = scmp.lt.u32.totalorder %s1743_s9, %s2141_s11 }
 0x302   : > { %p1745_p5 = pnand %p1744_p11, %p2249_p7 }
 0x303   : > { %p1750_p13 = por %p1749_p2, %p1748_p6 }
 0x304   : > { %p1746_p4 = pneg %p1745_p5 }
 0x305   : > { %p1752_p0 = por %p1751_p3, %p1750_p13 }
 0x307   : > { %p1753_p1 = pnand %p1752_p0, %p1746_p4 }
 0x309   : > { %1756 = shalt.err (!%p1753_p1)
}
 0x30a   : > { %1563 = dma.vmem_to_hbm [thread:$0]  (%p2249_p7), %s1275_s13, 128, %s2141_s11, %s1246_s26  }
 0x30b   : > { %s306_s24 = scalar_lea.vmem [#allocation8], %s2075_s12  ;;  %s2169_s14 = scalar_lea.hbm %s2221_s3, %s1448_s5 }
 0x30c   : > { %s1260_s21 = sshll.u32 %s306_s24, 4  ;;  %s1241_s1 = scalar_lea.sflag [#allocation4], %s2072_s25  ;;  %s2171_s21 = int_to_ptr.vmem [resolvable:$true] %s1260_s21 }
 0x30d   : > { %s1757_s7 = scalar_lea.vmem %s2171_s21, 128  ;;  %s1855_s18 = smov [#allocation8]  }
 0x30e   : > { %p1758_p8 = scmp.ne.s32.totalorder %s2171_s21, %s1757_s7  ;;  %s1761_s12 = sshll.u32 %s1855_s18, 4  ;;  %s1762_s12 = int_to_ptr.vmem [resolvable:$false] %s1761_s12 }
 0x30f   : > { %s1763_s5 = scalar_lea.vmem %s1762_s12, 256  ;;  %p1764_p12 = scmp.lt.s32.totalorder %s2171_s21, %s1762_s12 }
 0x310   : > { %p1759_p9 = pnand %p1758_p8, %p2249_p7  ;;  %p1765_p11 = scmp.lt.s32.totalorder %s1763_s5, %s1757_s7 }
 0x312   : > { %p1760_p10 = pneg %p1759_p9  ;;  %p1766_p5 = por %p1765_p11, %p1764_p12 }
 0x314   : > { %p1767_p4 = pnand %p1766_p5, %p1760_p10 }
 0x3d0   : > { %v1235_v45 = vpop.f32.mrb[0].mxu1 }
 0x3d1   : > { %1239 = vst.msk [vmem:[%s306_s24] sm:$0xff] %vm318_vm1, %v1235_v45  ;;  %v1535_v46 = vpop.f32.mrb[1].mxu1 }
 0x3d2   : > { %1770 = shalt.err (!%p1767_p4)
}
 0x3d3   : > { %s1771_s25 = scalar_lea.hbm %s2169_s14, 128  ;;  %s1775_s26 = scalar_lea.hbm %s2221_s3, 1024 }
 0x3d4   : > { %p1772_p6 = scmp.ne.s32.totalorder %s2169_s14, %s1771_s25  ;;  %p1776_p3 = scmp.lt.u32.totalorder %s2169_s14, %s2221_s3 }
 0x3d5   : > { %p1777_p0 = scmp.lt.u32.totalorder %s1775_s26, %s1771_s25  ;;  %p1779_p8 = scmp.lt.u32.totalorder %s1771_s25, %s2169_s14 }
 0x3d6   : > { %p1773_p2 = pnand %p1772_p6, %p2249_p7 }
 0x3d7   : > { %p1778_p1 = por %p1777_p0, %p1776_p3 }
 0x3d8   : > { %p1774_p13 = pneg %p1773_p2 }
 0x3d9   : > { %p1780_p9 = por %p1779_p8, %p1778_p1 }
 0x3db   : > { %p1781_p10 = pnand %p1780_p9, %p1774_p13 }
 0x3dd   : > { %1784 = shalt.err (!%p1781_p10)
}
 0x3de   : > { %1562 = dma.vmem_to_hbm [thread:$0]  (%p2249_p7), %s2171_s21, 128, %s2169_s14, %s1241_s1  }
 0x3df PF: > { %s2250_s9 = sld [smem:[#allocation18_spill]]  ;;  %p1584_p12 = scmp.ge.s32.totalorder %s1847_s20, 2 }
 0x3e0   : > { %s1286_s10 = sand.u32 1, %s1827_s15  }
 0x3e1   : > { %s1287_s30 = scalar_lea.sflag [#allocation4], %s1286_s10 }
 0x3e5   : > { %p2251_p11 = scmp.ne.s32.totalorder %s2250_s9, 0 }
 0x3e7   : > { %p1577_p5 = pnand %p1584_p12, %p2251_p11 }
 0x3e9   : > { %1818 = dma.done.wait (!%p1577_p5), %s1287_s30, 128  }
 0x3ea   : > { %1820 = vsyncadd (!%p1577_p5), %s1287_s30, 4294967168  ;;  %s1296_s19 = scalar_lea.sflag [#allocation10], %s1286_s10 }
 0x3eb   : > { %1822 = dma.done.wait (!%p1577_p5), %s1296_s19, 128  }
 0x3ec   : > { %1824 = vsyncadd (!%p1577_p5), %s1296_s19, 4294967168  ;;  %s27_s20 = sadd.s32 1, %s1847_s20   ;;  %s2252_s28 = sld [smem:[#allocation17_spill]] }
 0x3ed   : > { %p24_p4 = scmp.ge.s32.totalorder %s27_s20, 10   ;;  %s2253_s18 = sld [smem:[#allocation15_spill]] }
 0x3ee   : > { %s2254_s19 = sld [smem:[#allocation16_spill]]  ;;  %s2255_s15 = smov %s1831_s16 }
 0x3ef   : > { %s2256_s16 = smov %s1835_s17  ;;  %26 = sbr.rel (!%p24_p4) target bundleno = 12 (0xc), region = 118 }
 0x3f2   : > { %s2257_s17 = smov %s2252_s28 }
 0x3f6   :  { %1301 = vsyncpa [#allocation3], 1 }
 0x3f7   :  { %1303 = vsyncpa [#allocation3 + $0x1], 1 }
 0x3f8   :  { %1304 = vsyncpa [#allocation6], 1 }
 0x3f9   :  { %1306 = vsyncpa [#allocation6 + $0x1], 1 }
 0x3fa   :  { %1307 = vsyncpa [#allocation4], 1 }
 0x3fb   :  { %1309 = vsyncpa [#allocation4 + $0x1], 1 }
 0x3fc   :  { %1310 = vsyncpa [#allocation10], 1 }
 0x3fd   :  { %1312 = vsyncpa [#allocation10 + $0x1], 1 }

</bundles_post_ra>
